<compile_context>
chip_gen: v7x
topology: tpu7x:2x2x1
jax: 0.10.0
libtpu: 0.0.40
codegen_flags: <defaults>
</compile_context>

<pallas_src>
import jax
import jax.numpy as jnp
from jax import lax
from jax.experimental import pallas as pl
from jax.experimental.pallas import tpu as pltpu

# ----- static model configuration -------------------------------------------------
N, CIN, H, W = 2, 4, 16, 16          # batch, in channels, spatial
COUT = 8                             # out channels
KH = KW = 3
STRIDE, PAD = 1, 1
HO, WO = H, W                        # output_size implied by k=3, s=1, p=1
HWO = HO * WO
K = CIN * KH * KW                    # im2col contraction size
SLOPE = 0.1                          # LeakyReLU negative slope
EPS = 1e-5                           # BatchNorm2d eps
N_STREAM = 3                         # base + element-norm + channel-norm streams


# ----- Pallas kernel ---------------------------------------------------------------
def _encoding_block_kernel(gamma_ref, patches_ref, w1_ref, b1_ref, wsoft_ref,
                           w2a_ref, w2b_ref, w2c_ref, b2_ref, bnw_ref, bnb_ref,
                           y_ref, wsoft_out_ref):
    gamma = gamma_ref[0]                                           # scalar from SMEM

    # 3x3 conv (im2col matmul on the MXU):  (COUT,K) @ (K, N*HWO)
    conv = jnp.dot(w1_ref[...], patches_ref[...],
                   preferred_element_type=jnp.float32) + b1_ref[...]   # (COUT, N*HWO)

    # base stream of the 1x1 "concat" conv, full width (can overlap tanh/means)
    out2_base = jnp.dot(w2a_ref[...], conv,
                        preferred_element_type=jnp.float32) + b2_ref[...]

    # --- element-norm stream: W = tanh(conv); W_soft EMA over batch mean -----------
    Wt = jnp.tanh(conv)                                            # EUP
    mean_w = jnp.zeros((COUT, HWO), jnp.float32)
    for n in range(N):                                             # mean over batch dim
        mean_w = mean_w + Wt[:, n * HWO:(n + 1) * HWO]
    mean_w = mean_w * (1.0 / N)
    wsoft_new = gamma * wsoft_ref[...] + (1.0 - gamma) * mean_w    # (COUT, HWO)
    wsoft_out_ref[...] = wsoft_new                                 # aliased in place

    # --- per-sample streams + remaining 1x1 conv contributions (no concats) --------
    relu_conv = jnp.maximum(conv, 0.0)
    inv_hwo = 1.0 / HWO
    inv_total = 1.0 / (N * HWO)

    out2_halves = []
    s1 = jnp.zeros((COUT, 1), jnp.float32)                         # sum(out2)
    s2 = jnp.zeros((COUT, 1), jnp.float32)                         # sum(out2^2)
    for n in range(N):
        sl = slice(n * HWO, (n + 1) * HWO)
        conv_n = conv[:, sl]
        elem_n = wsoft_new * Wt[:, sl]                             # element-norm stream
        cw_n = jnp.sum(relu_conv[:, sl], axis=1, keepdims=True) * inv_hwo
        chan_n = cw_n * conv_n                                     # channel-norm stream
        out2_n = (out2_base[:, sl]
                  + jnp.dot(w2b_ref[...], elem_n, preferred_element_type=jnp.float32)
                  + jnp.dot(w2c_ref[...], chan_n, preferred_element_type=jnp.float32))
        out2_halves.append(out2_n)
        # one-pass BatchNorm statistics (accumulated across batch)
        s1 = s1 + jnp.sum(out2_n, axis=1, keepdims=True)
        s2 = s2 + jnp.sum(out2_n * out2_n, axis=1, keepdims=True)

    # --- BatchNorm2d (training mode, biased batch stats) + LeakyReLU ---------------
    mu = s1 * inv_total
    var = s2 * inv_total - mu * mu                                 # E[x^2] - mu^2
    scale = lax.rsqrt(var + EPS) * bnw_ref[...]
    shift = bnb_ref[...] - mu * scale
    for n in range(N):
        bn = out2_halves[n] * scale + shift
        y_ref[n] = jnp.where(bn >= 0.0, bn, SLOPE * bn)            # lane-dense (8,256)


# ----- wrapper ---------------------------------------------------------------------
@jax.jit
def encoding_block_forward(x, params, w_soft, gamma):
    """x: (N,CIN,H,W) NCHW; w_soft: (1,COUT,HO,WO); returns (y, new_w_soft) in NCHW."""
    w_conv, b_conv, w_cat, b_cat, bn_w, bn_b = params

    # im2col glue: taps enumerated in (cin, kh, kw) order so stack(axis=0) is already
    # the (K, N*HWO) layout the kernel wants -- no 5-D transpose / HBM relayout.
    xp = jnp.pad(x, ((0, 0), (0, 0), (PAD, PAD), (PAD, PAD)))
    taps = [xp[:, c, kh:kh + HO, kw:kw + WO]                       # (N, HO, WO) each
            for c in range(CIN) for kh in range(KH) for kw in range(KW)]
    patches_t = jnp.stack(taps, axis=0).reshape(K, N * HWO)        # (36, 512)
    # TODO(synk): for full fusion, move im2col into the kernel (9 shifted matmuls on
    # the padded input) to avoid the intermediate (36,512) HBM array entirely.

    w1 = w_conv.reshape(COUT, K)
    b1 = b_conv.reshape(COUT, 1)
    w2 = w_cat.reshape(COUT, N_STREAM * COUT)
    w2a = w2[:, 0:COUT]                # base (conv) stream
    w2b = w2[:, COUT:2 * COUT]         # element-norm stream
    w2c = w2[:, 2 * COUT:]             # channel-norm stream
    b2 = b_cat.reshape(COUT, 1)
    wsoft_t = w_soft.reshape(COUT, HWO)
    gamma_arr = jnp.asarray([gamma], jnp.float32)

    cost = pl.CostEstimate(
        flops=2 * (COUT * K * N * HWO + N_STREAM * COUT * COUT * N * HWO),
        transcendentals=COUT * N * HWO + COUT,
        bytes_accessed=4 * (K * N * HWO + COUT * K + 3 * COUT * COUT + 5 * COUT
                            + 2 * COUT * HWO + N * COUT * HWO) + 4,
    )

    y_nm, wsoft_new = pl.pallas_call(
        _encoding_block_kernel,
        out_shape=(jax.ShapeDtypeStruct((N, COUT, HWO), jnp.float32),   # N-major, no
                   jax.ShapeDtypeStruct((COUT, HWO), jnp.float32)),     # post-transpose
        in_specs=[pl.BlockSpec(memory_space=pltpu.MemorySpace.SMEM)] +
                 [pl.BlockSpec(memory_space=pltpu.MemorySpace.VMEM)] * 10,
        out_specs=(pl.BlockSpec(memory_space=pltpu.MemorySpace.VMEM),
                   pl.BlockSpec(memory_space=pltpu.MemorySpace.VMEM)),
        input_output_aliases={4: 1},   # wsoft_t (input 4) updated in place -> output 1
        cost_estimate=cost,
    )(gamma_arr, patches_t, w1, b1, wsoft_t, w2a, w2b, w2c, b2,
      bn_w.reshape(COUT, 1), bn_b.reshape(COUT, 1))

    y = y_nm.reshape(N, COUT, HO, WO)                              # pure reshape (NCHW)
    new_w_soft = wsoft_new.reshape(1, COUT, HO, WO)
    return y, new_w_soft


# ----- pure-JAX reference (for correctness check) -----------------------------------
def reference_forward(x, params, w_soft, gamma):
    w_conv, b_conv, w_cat, b_cat, bn_w, bn_b = params
    dn = ('NCHW', 'OIHW', 'NCHW')
    conv = lax.conv_general_dilated(x, w_conv, (STRIDE, STRIDE),
                                    ((PAD, PAD), (PAD, PAD)),
                                    dimension_numbers=dn) + b_conv[None, :, None, None]
    Wt = jnp.tanh(conv)
    w_soft_new = gamma * w_soft + (1.0 - gamma) * jnp.mean(Wt, axis=0, keepdims=True)
    elem = w_soft_new * Wt
    cw = jnp.mean(jnp.maximum(conv, 0.0), axis=(2, 3), keepdims=True)
    chan = cw * conv
    cat = jnp.concatenate([conv, elem, chan], axis=1)
    out2 = lax.conv_general_dilated(cat, w_cat, (1, 1), 'VALID',
                                    dimension_numbers=dn) + b_cat[None, :, None, None]
    mu = jnp.mean(out2, axis=(0, 2, 3), keepdims=True)
    var = jnp.mean((out2 - mu) ** 2, axis=(0, 2, 3), keepdims=True)
    bn = (out2 - mu) / jnp.sqrt(var + EPS) * bn_w[None, :, None, None] + bn_b[None, :, None, None]
    return jnp.where(bn >= 0.0, bn, SLOPE * bn), w_soft_new


# ----- main ------------------------------------------------------------------------
if __name__ == "__main__":
    key = jax.random.PRNGKey(0)
    ks = jax.random.split(key, 8)
    x = jax.random.normal(ks[0], (N, CIN, H, W), jnp.float32)

    # deterministic synthetic parameters (shapes from EncodingBlock.__init__)
    w_conv = 0.1 * jax.random.normal(ks[1], (COUT, CIN, KH, KW), jnp.float32)
    b_conv = 0.1 * jax.random.normal(ks[2], (COUT,), jnp.float32)
    w_cat  = 0.1 * jax.random.normal(ks[3], (COUT, N_STREAM * COUT, 1, 1), jnp.float32)
    b_cat  = 0.1 * jax.random.normal(ks[4], (COUT,), jnp.float32)
    bn_w   = 1.0 + 0.1 * jax.random.normal(ks[5], (COUT,), jnp.float32)
    bn_b   = 0.1 * jax.random.normal(ks[6], (COUT,), jnp.float32)
    # W_soft is zeros in __init__; use a non-trivial value as if set via set_W_soft().
    w_soft = 0.1 * jax.random.normal(ks[7], (1, COUT, HO, WO), jnp.float32)
    gamma = 0.25

    params = (w_conv, b_conv, w_cat, b_cat, bn_w, bn_b)

    y, w_soft_new = encoding_block_forward(x, params, w_soft, gamma)
    jax.block_until_ready((y, w_soft_new))

    y_ref, w_soft_ref = reference_forward(x, params, w_soft, gamma)
    assert y.shape == (N, COUT, HO, WO) and w_soft_new.shape == (1, COUT, HO, WO)
    assert jnp.allclose(y, y_ref, atol=2e-3, rtol=2e-3), "output mismatch vs reference"
    assert jnp.allclose(w_soft_new, w_soft_ref, atol=2e-3, rtol=2e-3), "W_soft mismatch"

    print("KERNEL_OK")
</pallas_src>

<mosaic_0001>
module attributes {stable_mosaic.version = 11 : i64} {
  func.func @_encoding_block_kernel(%arg0: memref<1xf32, #tpu.memory_space<smem>>, %arg1: memref<36x512xf32, #tpu.memory_space<vmem>>, %arg2: memref<8x36xf32, #tpu.memory_space<vmem>>, %arg3: memref<8x1xf32, #tpu.memory_space<vmem>>, %arg4: memref<8x256xf32, #tpu.memory_space<vmem>>, %arg5: memref<8x8xf32, #tpu.memory_space<vmem>>, %arg6: memref<8x8xf32, #tpu.memory_space<vmem>>, %arg7: memref<8x8xf32, #tpu.memory_space<vmem>>, %arg8: memref<8x1xf32, #tpu.memory_space<vmem>>, %arg9: memref<8x1xf32, #tpu.memory_space<vmem>>, %arg10: memref<8x1xf32, #tpu.memory_space<vmem>>, %arg11: memref<2x8x256xf32, #tpu.memory_space<vmem>>, %arg12: memref<8x256xf32, #tpu.memory_space<vmem>>) attributes {dimension_semantics = [], scalar_prefetch = 0 : i64, scratch_operands = 0 : i64, tpu.core_type = #tpu.core_type<tc>} {
    %c0 = arith.constant 0 : index
    %0 = memref.load %arg0[%c0] : memref<1xf32, #tpu.memory_space<smem>>
    %c0_0 = arith.constant 0 : index
    %c0_1 = arith.constant 0 : index
    %1 = vector.load %arg2[%c0_0, %c0_1] : memref<8x36xf32, #tpu.memory_space<vmem>>, vector<8x36xf32>
    %c0_2 = arith.constant 0 : index
    %c0_3 = arith.constant 0 : index
    %2 = vector.load %arg1[%c0_2, %c0_3] : memref<36x512xf32, #tpu.memory_space<vmem>>, vector<36x512xf32>
    %cst = arith.constant dense<0.000000e+00> : vector<8x512xf32>
    %3 = tpu.matmul %1, %2, %cst {dimension_numbers = #tpu.dot_dimension_numbers<[1], [0], [0], [1], [0, 0, 1, 1], [], []>} : vector<8x36xf32>, vector<36x512xf32>, vector<8x512xf32> -> vector<8x512xf32>
    %c0_4 = arith.constant 0 : index
    %c0_5 = arith.constant 0 : index
    %4 = vector.load %arg3[%c0_4, %c0_5] : memref<8x1xf32, #tpu.memory_space<vmem>>, vector<8x1xf32>
    %5 = vector.broadcast %4 : vector<8x1xf32> to vector<8x512xf32>
    %6 = arith.addf %3, %5 : vector<8x512xf32>
    %c0_6 = arith.constant 0 : index
    %c0_7 = arith.constant 0 : index
    %7 = vector.load %arg5[%c0_6, %c0_7] : memref<8x8xf32, #tpu.memory_space<vmem>>, vector<8x8xf32>
    %cst_8 = arith.constant dense<0.000000e+00> : vector<8x512xf32>
    %8 = tpu.matmul %7, %6, %cst_8 {dimension_numbers = #tpu.dot_dimension_numbers<[1], [0], [0], [1], [0, 0, 1, 1], [], []>} : vector<8x8xf32>, vector<8x512xf32>, vector<8x512xf32> -> vector<8x512xf32>
    %c0_9 = arith.constant 0 : index
    %c0_10 = arith.constant 0 : index
    %9 = vector.load %arg8[%c0_9, %c0_10] : memref<8x1xf32, #tpu.memory_space<vmem>>, vector<8x1xf32>
    %10 = vector.broadcast %9 : vector<8x1xf32> to vector<8x512xf32>
    %11 = arith.addf %8, %10 : vector<8x512xf32>
    %12 = math.tanh %6 : vector<8x512xf32>
    %cst_11 = arith.constant 0.000000e+00 : f32
    %13 = vector.broadcast %cst_11 : f32 to vector<8x256xf32>
    %14 = vector.extract_strided_slice %12 {offsets = [0, 0], sizes = [8, 256], strides = [1, 1]} : vector<8x512xf32> to vector<8x256xf32>
    %15 = arith.addf %13, %14 : vector<8x256xf32>
    %16 = vector.extract_strided_slice %12 {offsets = [0, 256], sizes = [8, 256], strides = [1, 1]} : vector<8x512xf32> to vector<8x256xf32>
    %17 = arith.addf %15, %16 : vector<8x256xf32>
    %cst_12 = arith.constant 5.000000e-01 : f32
    %18 = vector.broadcast %cst_12 : f32 to vector<8x256xf32>
    %19 = arith.mulf %17, %18 : vector<8x256xf32>
    %c0_13 = arith.constant 0 : index
    %c0_14 = arith.constant 0 : index
    %20 = vector.load %arg4[%c0_13, %c0_14] : memref<8x256xf32, #tpu.memory_space<vmem>>, vector<8x256xf32>
    %21 = vector.broadcast %0 : f32 to vector<8x256xf32>
    %22 = arith.mulf %21, %20 : vector<8x256xf32>
    %cst_15 = arith.constant 1.000000e+00 : f32
    %23 = arith.subf %cst_15, %0 : f32
    %24 = vector.broadcast %23 : f32 to vector<8x256xf32>
    %25 = arith.mulf %24, %19 : vector<8x256xf32>
    %26 = arith.addf %22, %25 : vector<8x256xf32>
    %c0_16 = arith.constant 0 : index
    %c0_17 = arith.constant 0 : index
    %27 = vector.load %arg12[%c0_16, %c0_17] : memref<8x256xf32, #tpu.memory_space<vmem>>, vector<8x256xf32>
    tpu.vector_store %arg12[%c0_16, %c0_17], %26 {strides = array<i32>} : memref<8x256xf32, #tpu.memory_space<vmem>>, vector<8x256xf32>,
    %cst_18 = arith.constant 0.000000e+00 : f32
    %28 = vector.broadcast %cst_18 : f32 to vector<8x512xf32>
    %29 = arith.maximumf %6, %28 : vector<8x512xf32>
    %cst_19 = arith.constant 0.000000e+00 : f32
    %30 = vector.broadcast %cst_19 : f32 to vector<8x1xf32>
    %cst_20 = arith.constant 0.000000e+00 : f32
    %31 = vector.broadcast %cst_20 : f32 to vector<8x1xf32>
    %32 = vector.extract_strided_slice %6 {offsets = [0, 0], sizes = [8, 256], strides = [1, 1]} : vector<8x512xf32> to vector<8x256xf32>
    %33 = vector.extract_strided_slice %12 {offsets = [0, 0], sizes = [8, 256], strides = [1, 1]} : vector<8x512xf32> to vector<8x256xf32>
    %34 = arith.mulf %26, %33 : vector<8x256xf32>
    %35 = vector.extract_strided_slice %29 {offsets = [0, 0], sizes = [8, 256], strides = [1, 1]} : vector<8x512xf32> to vector<8x256xf32>
    %cst_21 = arith.constant dense<0.000000e+00> : vector<8xf32>
    %36 = vector.multi_reduction <add>, %35, %cst_21 [1] : vector<8x256xf32> to vector<8xf32>
    %37 = vector.shape_cast %36 : vector<8xf32> to vector<8x1xf32>
    %cst_22 = arith.constant 3.906250e-03 : f32
    %38 = vector.broadcast %cst_22 : f32 to vector<8x1xf32>
    %39 = arith.mulf %37, %38 : vector<8x1xf32>
    %40 = vector.broadcast %39 : vector<8x1xf32> to vector<8x256xf32>
    %41 = arith.mulf %40, %32 : vector<8x256xf32>
    %42 = vector.extract_strided_slice %11 {offsets = [0, 0], sizes = [8, 256], strides = [1, 1]} : vector<8x512xf32> to vector<8x256xf32>
    %c0_23 = arith.constant 0 : index
    %c0_24 = arith.constant 0 : index
    %43 = vector.load %arg6[%c0_23, %c0_24] : memref<8x8xf32, #tpu.memory_space<vmem>>, vector<8x8xf32>
    %cst_25 = arith.constant dense<0.000000e+00> : vector<8x256xf32>
    %44 = tpu.matmul %43, %34, %cst_25 {dimension_numbers = #tpu.dot_dimension_numbers<[1], [0], [0], [1], [0, 0, 1, 1], [], []>} : vector<8x8xf32>, vector<8x256xf32>, vector<8x256xf32> -> vector<8x256xf32>
    %45 = arith.addf %42, %44 : vector<8x256xf32>
    %c0_26 = arith.constant 0 : index
    %c0_27 = arith.constant 0 : index
    %46 = vector.load %arg7[%c0_26, %c0_27] : memref<8x8xf32, #tpu.memory_space<vmem>>, vector<8x8xf32>
    %cst_28 = arith.constant dense<0.000000e+00> : vector<8x256xf32>
    %47 = tpu.matmul %46, %41, %cst_28 {dimension_numbers = #tpu.dot_dimension_numbers<[1], [0], [0], [1], [0, 0, 1, 1], [], []>} : vector<8x8xf32>, vector<8x256xf32>, vector<8x256xf32> -> vector<8x256xf32>
    %48 = arith.addf %45, %47 : vector<8x256xf32>
    %cst_29 = arith.constant dense<0.000000e+00> : vector<8xf32>
    %49 = vector.multi_reduction <add>, %48, %cst_29 [1] : vector<8x256xf32> to vector<8xf32>
    %50 = vector.shape_cast %49 : vector<8xf32> to vector<8x1xf32>
    %51 = arith.addf %30, %50 : vector<8x1xf32>
    %52 = arith.mulf %48, %48 : vector<8x256xf32>
    %cst_30 = arith.constant dense<0.000000e+00> : vector<8xf32>
    %53 = vector.multi_reduction <add>, %52, %cst_30 [1] : vector<8x256xf32> to vector<8xf32>
    %54 = vector.shape_cast %53 : vector<8xf32> to vector<8x1xf32>
    %55 = arith.addf %31, %54 : vector<8x1xf32>
    %56 = vector.extract_strided_slice %6 {offsets = [0, 256], sizes = [8, 256], strides = [1, 1]} : vector<8x512xf32> to vector<8x256xf32>
    %57 = vector.extract_strided_slice %12 {offsets = [0, 256], sizes = [8, 256], strides = [1, 1]} : vector<8x512xf32> to vector<8x256xf32>
    %58 = arith.mulf %26, %57 : vector<8x256xf32>
    %59 = vector.extract_strided_slice %29 {offsets = [0, 256], sizes = [8, 256], strides = [1, 1]} : vector<8x512xf32> to vector<8x256xf32>
    %cst_31 = arith.constant dense<0.000000e+00> : vector<8xf32>
    %60 = vector.multi_reduction <add>, %59, %cst_31 [1] : vector<8x256xf32> to vector<8xf32>
    %61 = vector.shape_cast %60 : vector<8xf32> to vector<8x1xf32>
    %cst_32 = arith.constant 3.906250e-03 : f32
    %62 = vector.broadcast %cst_32 : f32 to vector<8x1xf32>
    %63 = arith.mulf %61, %62 : vector<8x1xf32>
    %64 = vector.broadcast %63 : vector<8x1xf32> to vector<8x256xf32>
    %65 = arith.mulf %64, %56 : vector<8x256xf32>
    %66 = vector.extract_strided_slice %11 {offsets = [0, 256], sizes = [8, 256], strides = [1, 1]} : vector<8x512xf32> to vector<8x256xf32>
    %c0_33 = arith.constant 0 : index
    %c0_34 = arith.constant 0 : index
    %67 = vector.load %arg6[%c0_33, %c0_34] : memref<8x8xf32, #tpu.memory_space<vmem>>, vector<8x8xf32>
    %cst_35 = arith.constant dense<0.000000e+00> : vector<8x256xf32>
    %68 = tpu.matmul %67, %58, %cst_35 {dimension_numbers = #tpu.dot_dimension_numbers<[1], [0], [0], [1], [0, 0, 1, 1], [], []>} : vector<8x8xf32>, vector<8x256xf32>, vector<8x256xf32> -> vector<8x256xf32>
    %69 = arith.addf %66, %68 : vector<8x256xf32>
    %c0_36 = arith.constant 0 : index
    %c0_37 = arith.constant 0 : index
    %70 = vector.load %arg7[%c0_36, %c0_37] : memref<8x8xf32, #tpu.memory_space<vmem>>, vector<8x8xf32>
    %cst_38 = arith.constant dense<0.000000e+00> : vector<8x256xf32>
    %71 = tpu.matmul %70, %65, %cst_38 {dimension_numbers = #tpu.dot_dimension_numbers<[1], [0], [0], [1], [0, 0, 1, 1], [], []>} : vector<8x8xf32>, vector<8x256xf32>, vector<8x256xf32> -> vector<8x256xf32>
    %72 = arith.addf %69, %71 : vector<8x256xf32>
    %cst_39 = arith.constant dense<0.000000e+00> : vector<8xf32>
    %73 = vector.multi_reduction <add>, %72, %cst_39 [1] : vector<8x256xf32> to vector<8xf32>
    %74 = vector.shape_cast %73 : vector<8xf32> to vector<8x1xf32>
    %75 = arith.addf %51, %74 : vector<8x1xf32>
    %76 = arith.mulf %72, %72 : vector<8x256xf32>
    %cst_40 = arith.constant dense<0.000000e+00> : vector<8xf32>
    %77 = vector.multi_reduction <add>, %76, %cst_40 [1] : vector<8x256xf32> to vector<8xf32>
    %78 = vector.shape_cast %77 : vector<8xf32> to vector<8x1xf32>
    %79 = arith.addf %55, %78 : vector<8x1xf32>
    %cst_41 = arith.constant 0.001953125 : f32
    %80 = vector.broadcast %cst_41 : f32 to vector<8x1xf32>
    %81 = arith.mulf %75, %80 : vector<8x1xf32>
    %cst_42 = arith.constant 0.001953125 : f32
    %82 = vector.broadcast %cst_42 : f32 to vector<8x1xf32>
    %83 = arith.mulf %79, %82 : vector<8x1xf32>
    %84 = arith.mulf %81, %81 : vector<8x1xf32>
    %85 = arith.subf %83, %84 : vector<8x1xf32>
    %cst_43 = arith.constant 9.99999974E-6 : f32
    %86 = vector.broadcast %cst_43 : f32 to vector<8x1xf32>
    %87 = arith.addf %85, %86 : vector<8x1xf32>
    %88 = math.rsqrt %87 : vector<8x1xf32>
    %c0_44 = arith.constant 0 : index
    %c0_45 = arith.constant 0 : index
    %89 = vector.load %arg9[%c0_44, %c0_45] : memref<8x1xf32, #tpu.memory_space<vmem>>, vector<8x1xf32>
    %90 = arith.mulf %88, %89 : vector<8x1xf32>
    %c0_46 = arith.constant 0 : index
    %c0_47 = arith.constant 0 : index
    %91 = vector.load %arg10[%c0_46, %c0_47] : memref<8x1xf32, #tpu.memory_space<vmem>>, vector<8x1xf32>
    %92 = arith.mulf %81, %90 : vector<8x1xf32>
    %93 = arith.subf %91, %92 : vector<8x1xf32>
    %94 = vector.broadcast %90 : vector<8x1xf32> to vector<8x256xf32>
    %95 = arith.mulf %48, %94 : vector<8x256xf32>
    %96 = vector.broadcast %93 : vector<8x1xf32> to vector<8x256xf32>
    %97 = arith.addf %95, %96 : vector<8x256xf32>
    %cst_48 = arith.constant 0.000000e+00 : f32
    %98 = vector.broadcast %cst_48 : f32 to vector<8x256xf32>
    %99 = arith.cmpf oge, %97, %98 : vector<8x256xf32>
    %cst_49 = arith.constant 1.000000e-01 : f32
    %100 = vector.broadcast %cst_49 : f32 to vector<8x256xf32>
    %101 = arith.mulf %100, %97 : vector<8x256xf32>
    %102 = arith.select %99, %97, %101 : vector<8x256xi1>, vector<8x256xf32>
    %c0_50 = arith.constant 0 : index
    %c0_51 = arith.constant 0 : index
    %c0_52 = arith.constant 0 : index
    %103 = vector.load %arg11[%c0_50, %c0_51, %c0_52] : memref<2x8x256xf32, #tpu.memory_space<vmem>>, vector<1x8x256xf32>
    %104 = vector.shape_cast %103 : vector<1x8x256xf32> to vector<8x256xf32>
    %105 = vector.shape_cast %102 : vector<8x256xf32> to vector<1x8x256xf32>
    tpu.vector_store %arg11[%c0_50, %c0_51, %c0_52], %105 {strides = array<i32>} : memref<2x8x256xf32, #tpu.memory_space<vmem>>, vector<1x8x256xf32>,
    %106 = vector.broadcast %90 : vector<8x1xf32> to vector<8x256xf32>
    %107 = arith.mulf %72, %106 : vector<8x256xf32>
    %108 = vector.broadcast %93 : vector<8x1xf32> to vector<8x256xf32>
    %109 = arith.addf %107, %108 : vector<8x256xf32>
    %cst_53 = arith.constant 0.000000e+00 : f32
    %110 = vector.broadcast %cst_53 : f32 to vector<8x256xf32>
    %111 = arith.cmpf oge, %109, %110 : vector<8x256xf32>
    %cst_54 = arith.constant 1.000000e-01 : f32
    %112 = vector.broadcast %cst_54 : f32 to vector<8x256xf32>
    %113 = arith.mulf %112, %109 : vector<8x256xf32>
    %114 = arith.select %111, %109, %113 : vector<8x256xi1>, vector<8x256xf32>
    %c1 = arith.constant 1 : index
    %c0_55 = arith.constant 0 : index
    %c0_56 = arith.constant 0 : index
    %115 = vector.load %arg11[%c1, %c0_55, %c0_56] : memref<2x8x256xf32, #tpu.memory_space<vmem>>, vector<1x8x256xf32>
    %116 = vector.shape_cast %115 : vector<1x8x256xf32> to vector<8x256xf32>
    %117 = vector.shape_cast %114 : vector<8x256xf32> to vector<1x8x256xf32>
    tpu.vector_store %arg11[%c1, %c0_55, %c0_56], %117 {strides = array<i32>} : memref<2x8x256xf32, #tpu.memory_space<vmem>>, vector<1x8x256xf32>,
    return
  }
}

</mosaic_0001>

<bundles_post_ra>
// kernel: encoding_block_forward.1
= control target key start
LH: loop header
LB: loop body
LE: loop exit
PB: predicated region body
PF: predicated region fallthrough
CT: control target
= control target key end

     0   :  { %v854_v3 = vmov 0.0   ;;  %v855_v8 = vmov 0   ;;  %vm73_vm0 = vcmask 1043456   ;;  %vm69_vm1 = vcmask 293888   ;;  %s1073_s1 = inlined_call_operand.vmem [shape: f32[36,512], index: 1, kind: input, shape index: {}]   ;;  %s1074_s3 = inlined_call_operand.vmem [shape: f32[8,1], index: 3, kind: input, shape index: {}]   ;;  %s1075_s2 = inlined_call_operand.vmem [shape: f32[8,36], index: 2, kind: input, shape index: {}]   ;;  %s1076_s5 = inlined_call_operand.vmem [shape: f32[8,8], index: 5, kind: input, shape index: {}]   ;;  %s1077_s0 = inlined_call_operand.<no memory space> [shape: f32[1], index: 0, kind: input, shape index: {}]   ;;  %s1078_s4 = inlined_call_operand.vmem [shape: f32[8,256], index: 4, kind: input, shape index: {}, may-alias: {4,12}]   ;;  %s1079_s12 = inlined_call_operand.vmem [shape: f32[8,256], index: 12, kind: output, shape index: {1}, may-alias: {4,12}]   ;;  %s1080_s6 = inlined_call_operand.vmem [shape: f32[8,8], index: 6, kind: input, shape index: {}]   ;;  %s1081_s8 = inlined_call_operand.vmem [shape: f32[8,1], index: 8, kind: input, shape index: {}]   ;;  %s1082_s7 = inlined_call_operand.vmem [shape: f32[8,8], index: 7, kind: input, shape index: {}]   ;;  %s1083_s9 = inlined_call_operand.vmem [shape: f32[8,1], index: 9, kind: input, shape index: {}]   ;;  %s1084_s10 = inlined_call_operand.vmem [shape: f32[8,1], index: 10, kind: input, shape index: {}]   ;;  %s1085_s11 = inlined_call_operand.vmem [shape: f32[2,8,256], index: 11, kind: output, shape index: {0}]  }
   0x1   :  { %v44_v0 = vld [vmem:[%s1073_s1 + $0x8] sm:$0xff]  ;;  %v46_v2 = vld [vmem:[%s1073_s1 + $0x18] sm:$0xff]  ;;  %150 = vmatprep.mubr.f32.mxu0 %v854_v3  ;;  %221 = vmatprep.mubr.f32.mxu1 %v854_v3  ;;  %v43_v6 = vld [vmem:[%s1073_s1] sm:$0xff]  ;;  %vm235_vm2 = vcmask 64512   ;;  %s396_s29 = ssub.f32 1.0, %s1077_s0  ;;  %v393_v51 = vstv %s1077_s0 }
   0x2   :  { %v48_v1 = vld [vmem:[%s1073_s1 + $0x28] sm:$0xff]  ;;  %v50_v5 = vld [vmem:[%s1073_s1 + $0x38] sm:$0xff]  ;;  %v47_v7 = vld [vmem:[%s1073_s1 + $0x20] sm:$0xff]  ;;  %842 = vset.pattern.permute.xlu0 %v855_v8  ;;  %843 = vset.pattern.permute.xlu1 %v855_v8 }
   0x3   :  { %v812_v4 = vpack.c.bf16 %v48_v1, %v44_v0  ;;  %v820_v9 = vpack.c.bf16 %v50_v5, %v46_v2  ;;  %v814_v10 = vpack.c.bf16 %v47_v7, %v43_v6  ;;  %v45_v11 = vld [vmem:[%s1073_s1 + $0x10] sm:$0xff]  ;;  %v52_v13 = vld [vmem:[%s1073_s1 + $0x48] sm:$0xff]  ;;  %v54_v16 = vld [vmem:[%s1073_s1 + $0x58] sm:$0xff]  ;;  %v397_v56 = vstv %s396_s29 }
   0x4   :  { %v49_v12 = vld [vmem:[%s1073_s1 + $0x30] sm:$0xff]  ;;  %v56_v15 = vld [vmem:[%s1073_s1 + $0x68] sm:$0xff]  ;;  %v58_v17 = vld [vmem:[%s1073_s1 + $0x78] sm:$0xff] }
   0x5   :  { %813 = vmatprep.subr.bf16.mxu0 %v812_v4  ;;  %v822_v14 = vpack.c.bf16 %v49_v12, %v45_v11  ;;  %821 = vmatprep.subr.bf16.mxu1 %v820_v9  ;;  %v816_v18 = vpack.c.bf16 %v56_v15, %v52_v13  ;;  %v824_v19 = vpack.c.bf16 %v58_v17, %v54_v16  ;;  %v51_v20 = vld [vmem:[%s1073_s1 + $0x40] sm:$0xff]  ;;  %v53_v22 = vld [vmem:[%s1073_s1 + $0x50] sm:$0xff]  ;;  %v60_v26 = vld [vmem:[%s1073_s1 + $0x88] sm:$0xf] }
   0x6   :  { %815 = vmatpush1.bf16.msra.mxu0 %v814_v10  ;;  %v55_v21 = vld [vmem:[%s1073_s1 + $0x60] sm:$0xff]  ;;  %v57_v24 = vld [vmem:[%s1073_s1 + $0x70] sm:$0xff]  ;;  %v62_v27 = vld [vmem:[%s1073_s1 + $0x98] sm:$0xf] }
   0x7   :  { %823 = vmatpush1.bf16.msra.mxu1 %v822_v14  ;;  %v818_v23 = vpack.c.bf16 %v55_v21, %v51_v20  ;;  %817 = vmatprep.subr.bf16.mxu0 %v816_v18  ;;  %v826_v25 = vpack.c.bf16 %v57_v24, %v53_v22  ;;  %v63_v28 = vld [vmem:[%s1074_s3] sm:$0xff]  ;;  %v61_v30 = vld [vmem:[%s1073_s1 + $0x90] sm:$0xf]  ;;  %v392_v55 = vld [vmem:[%s1078_s4 + $0x8] sm:$0xff] }
   0x8   :  { %825 = vmatprep.subr.bf16.mxu1 %v824_v19  ;;  %66 = vperm.xlu0 %842, %v63_v28   ;;  %v59_v29 = vld [vmem:[%s1073_s1 + $0x80] sm:$0xf]  ;;  %v395_v61 = vmul.f32 %v393_v51, %v392_v55 }
   0x9   :  { %v42_v31 = vld [vmem:[%s1075_s2] sm:$0xff] }
   0xa   :  { %819 = vmatpush1.bf16.msra.mxu0 %v818_v23  ;;  %v228_v42 = vld [vmem:[%s1076_s5] sm:$0xff] }
   0xb   :  { %827 = vmatpush1.bf16.msra.mxu1 %v826_v25  ;;  %798 = vmatprep.subr.msk.mxu0 %vm73_vm0, %v60_v26  ;;  %v391_v50 = vld [vmem:[%s1078_s4] sm:$0xff] }
   0xc   :  { %801 = vmatprep.subr.msk.mxu1 %vm73_vm0, %v62_v27  ;;  %v394_v59 = vmul.f32 %v393_v51, %v391_v50  ;;  %v416_v7 = vld [vmem:[%s1080_s6] sm:$0xff] }
   0xd   :  { %v229_v8 = vld [vmem:[%s1081_s8] sm:$0xff] }
   0xe   :  { %799 = vmatpush1.msk.msra.mxu0 %vm73_vm0, %v59_v29 }
   0xf   :  { %802 = vmatpush1.msk.msra.mxu1 %vm73_vm0, %v61_v30  ;;  %800 = vmatmul.mubr.msk.f32.vlgmr.msra.gmra.mrb[0].mxu0 %vm69_vm1, %v42_v31 }
  0x10   :  { %803 = vmatmul.mubr.msk.f32.vlgmr.msra.gmra.mrb[0].mxu1 %vm69_vm1, %v42_v31  ;;  %303 = vmatprep.mubr.f32.mxu0 %v854_v3 }
  0x11   :  { %374 = vmatprep.mubr.f32.mxu1 %v854_v3 }
  0x87   :  { %v67_v32 = vpop.permute.xlu0 %66 }
  0xe2   :  { %v152_v33 = vpop.f32.mrb[0].mxu0 }
  0xe3   :  { %v991_v34 = vadd.f32 %v152_v33, %v67_v32  ;;  %v223_v35 = vpop.f32.mrb[0].mxu1  ;;  %v154_v36 = vpop.f32.mrb[1].mxu0 }
  0xe4   :  { %v993_v37 = vadd.f32 %v223_v35, %v67_v32  ;;  %v995_v38 = vadd.f32 %v154_v36, %v67_v32  ;;  %v225_v39 = vpop.f32.mrb[1].mxu1 }
  0xe5   :  { %844 = vtanh.f32 %v991_v34  ;;  %v998_v40 = vadd.f32 %v225_v39, %v67_v32  ;;  %v404_v41 = vmax.f32 %v991_v34, 0.0 }
  0xe6   :  { %846 = vtanh.f32 %v993_v37  ;;  %239 = vmatprep.subr.mxu0 %v995_v38  ;;  %v406_v43 = vmax.f32 %v993_v37, 0.0  ;;  %v405_v44 = vmax.f32 %v995_v38, 0.0 }
  0xe7   :  { %848 = vtanh.f32 %v995_v38  ;;  %310 = vmatprep.subr.mxu1 %v998_v40  ;;  %240 = vmatpush1.msra.mxu0 %v991_v34  ;;  %v407_v45 = vmax.f32 %v998_v40, 0.0 }
  0xe8   :  { %850 = vtanh.f32 %v998_v40  ;;  %311 = vmatpush1.msra.mxu1 %v993_v37  ;;  %v410_v46 = vadd.f32 %v405_v44, %v404_v41  ;;  %804 = vmatmul.mubr.msk.f32.vlgmr.msra.gmra.mrb[2].mxu0 %vm235_vm2, %v228_v42 }
  0xe9   :  { %v582_v47 = vadd.f32 %v407_v45, %v406_v43  ;;  %805 = vmatmul.mubr.msk.f32.vlgmr.msra.gmra.mrb[2].mxu1 %vm235_vm2, %v228_v42  ;;  %484 = vmatprep.mubr.f32.mxu0 %v854_v3  ;;  %v750_v45 = vld [vmem:[%s1083_s9] sm:$0xff] }
  0xea   :  { %411 = vadd.xlane.f32.xlu0 %v410_v46  ;;  %652 = vmatprep.mubr.f32.mxu1 %v854_v3 }
  0xeb   :  { %583 = vadd.xlane.f32.xlu1 %v582_v47 }
  0xef   :  { %v845_v48 = vpop.eup %844 }
  0xf0   :  { %v847_v49 = vpop.eup %846 }
  0xf1   :  { %v849_v52 = vpop.eup %848  ;;  %v387_v53 = vadd.f32 %v847_v49, %v845_v48 }
  0xf2   :  { %v851_v54 = vpop.eup %850 }
  0xf3   :  { %v388_v57 = vadd.f32 %v851_v54, %v849_v52  ;;  %v389_v58 = vmul.f32 0.5, %v387_v53 }
  0xf5   :  { %v390_v60 = vmul.f32 0.5, %v388_v57  ;;  %v398_v62 = vmul.f32 %v397_v56, %v389_v58 }
  0xf7   :  { %v399_v63 = vmul.f32 %v397_v56, %v390_v60  ;;  %v400_v0 = vadd.f32 %v398_v62, %v394_v59 }
  0xf9   :  { %v401_v1 = vadd.f32 %v399_v63, %v395_v61  ;;  %402 = vst [vmem:[%s1079_s12] sm:$0xff] %v400_v0  ;;  %v408_v5 = vmul.f32 %v845_v48, %v400_v0  ;;  %v580_v6 = vmul.f32 %v847_v49, %v400_v0  ;;  %v752_v48 = vld [vmem:[%s1084_s10] sm:$0xff] }
  0xfb   :  { %403 = vst [vmem:[%s1079_s12 + $0x8] sm:$0xff] %v401_v1  ;;  %v409_v2 = vmul.f32 %v849_v52, %v401_v1  ;;  %v581_v4 = vmul.f32 %v851_v54, %v401_v1 }
  0xfc   :  { %232 = vperm.xlu1 %843, %v229_v8  }
  0xfd   :  { %420 = vmatprep.subr.mxu0 %v409_v2  ;;  %588 = vmatprep.subr.mxu1 %v581_v4 }
  0xfe   :  { %421 = vmatpush1.msra.mxu0 %v408_v5  ;;  %589 = vmatpush1.msra.mxu1 %v580_v6 }
  0xff   :  { %806 = vmatmul.mubr.msk.f32.vlgmr.msra.gmra.mrb[2].mxu0 %vm235_vm2, %v416_v7  ;;  %808 = vmatmul.mubr.msk.f32.vlgmr.msra.gmra.mrb[2].mxu1 %vm235_vm2, %v416_v7 }
 0x100   :  { %561 = vmatprep.mubr.f32.mxu0 %v854_v3  ;;  %725 = vmatprep.mubr.f32.mxu1 %v854_v3  ;;  %v493_v3 = vld [vmem:[%s1082_s7] sm:$0xff] }
 0x177   :  { %v412_v9 = vpop.xlane.xlu0 %411 }
 0x178   :  { %v584_v10 = vpop.xlane.xlu1 %583  ;;  %v413_v11 = vmul.f32 0.00390625, %v412_v9 }
 0x179   :  { %v585_v12 = vmul.f32 0.00390625, %v584_v10 }
 0x17a   :  { %v414_v13 = vmul.f32 %v413_v11, %v991_v34  ;;  %v415_v14 = vmul.f32 %v413_v11, %v995_v38 }
 0x17b   :  { %v586_v15 = vmul.f32 %v585_v12, %v993_v37  ;;  %v587_v16 = vmul.f32 %v585_v12, %v998_v40 }
 0x17c   :  { %497 = vmatprep.subr.mxu0 %v415_v14  ;;  %v233_v17 = vpop.permute.xlu1 %232 }
 0x17d   :  { %661 = vmatprep.subr.mxu1 %v587_v16  ;;  %498 = vmatpush1.msra.mxu0 %v414_v13 }
 0x17e   :  { %662 = vmatpush1.msra.mxu1 %v586_v15  ;;  %807 = vmatmul.mubr.msk.f32.vlgmr.msra.gmra.mrb[2].mxu0 %vm235_vm2, %v493_v3 }
 0x17f   :  { %809 = vmatmul.mubr.msk.f32.vlgmr.msra.gmra.mrb[2].mxu1 %vm235_vm2, %v493_v3 }
 0x251   :  { %v563_v18 = vpop.f32.mrb[2].mxu0 }
 0x252   :  { %v828_v19 = vadd.f32 %v563_v18, %v233_v17  ;;  %v727_v20 = vpop.f32.mrb[2].mxu1  ;;  %v565_v21 = vpop.f32.mrb[3].mxu0 }
 0x253   :  { %v830_v22 = vadd.f32 %v727_v20, %v233_v17  ;;  %v829_v23 = vadd.f32 %v565_v21, %v233_v17  ;;  %v729_v24 = vpop.f32.mrb[3].mxu1 }
 0x254   :  { %v831_v25 = vadd.f32 %v729_v24, %v233_v17  ;;  %v574_v28 = vmul.f32 %v828_v19, %v828_v19 }
 0x255   :  { %v570_v26 = vadd.f32 %v829_v23, %v828_v19  ;;  %v575_v29 = vmul.f32 %v829_v23, %v829_v23  ;;  %v738_v31 = vmul.f32 %v830_v22, %v830_v22 }
 0x256   :  { %v734_v27 = vadd.f32 %v831_v25, %v830_v22  ;;  %v739_v32 = vmul.f32 %v831_v25, %v831_v25 }
 0x257   :  { %571 = vadd.xlane.f32.xlu1 %v570_v26  ;;  %v576_v30 = vadd.f32 %v575_v29, %v574_v28 }
 0x258   :  { %735 = vadd.xlane.f32.xlu0 %v734_v27  ;;  %v740_v33 = vadd.f32 %v739_v32, %v738_v31 }
 0x25c   :  { %577 = vadd.xlane.f32.xlu0 %v576_v30 }
 0x260   :  { %741 = vadd.xlane.f32.xlu0 %v740_v33 }
 0x2e4   :  { %v572_v35 = vpop.xlane.xlu1 %571 }
 0x2e5   :  { %v736_v34 = vpop.xlane.xlu0 %735 }
 0x2e6   :  { %v737_v36 = vadd.f32 %v736_v34, %v572_v35 }
 0x2e8   :  { %v744_v38 = vmul.f32 0.001953125, %v737_v36 }
 0x2e9   :  { %v578_v37 = vpop.xlane.xlu0 %577 }
 0x2ea   :  { %v746_v41 = vmul.f32 %v744_v38, %v744_v38 }
 0x2ed   :  { %v742_v39 = vpop.xlane.xlu0 %741 }
 0x2ee   :  { %v743_v40 = vadd.f32 %v742_v39, %v578_v37 }
 0x2f0   :  { %v745_v42 = vmul.f32 0.001953125, %v743_v40 }
 0x2f2   :  { %v747_v43 = vsub.f32 %v745_v42, %v746_v41 }
 0x2f4   :  { %v748_v44 = vadd.f32 1e-05, %v747_v43 }
 0x2f6   :  { %852 = vrsqrt.f32 %v748_v44 }
 0x300   :  { %v853_v46 = vpop.eup %852 }
 0x301   :  { %v751_v47 = vmul.f32 %v853_v46, %v750_v45 }
 0x303   :  { %757 = vperm.xlu0 %842, %v751_v47   ;;  %v753_v49 = vmul.f32 %v751_v47, %v744_v38 }
 0x305   :  { %v754_v50 = vsub.f32 %v752_v48, %v753_v49 }
 0x307   :  { %764 = vperm.xlu1 %843, %v754_v50  }
 0x382   :  { %v758_v51 = vpop.permute.xlu0 %757 }
 0x383   :  { %v760_v52 = vmul.f32 %v828_v19, %v758_v51  ;;  %v761_v53 = vmul.f32 %v829_v23, %v758_v51  ;;  %v777_v54 = vmul.f32 %v830_v22, %v758_v51  ;;  %v778_v55 = vmul.f32 %v831_v25, %v758_v51 }
 0x386   :  { %v765_v56 = vpop.permute.xlu1 %764 }
 0x387   :  { %v767_v57 = vadd.f32 %v765_v56, %v760_v52  ;;  %v768_v58 = vadd.f32 %v765_v56, %v761_v53  ;;  %v779_v59 = vadd.f32 %v777_v54, %v765_v56  ;;  %v780_v60 = vadd.f32 %v778_v55, %v765_v56 }
 0x389   :  { %vm769_vm3 = vcmp.ge.f32.partialorder %v767_v57, 0.0  ;;  %vm770_vm4 = vcmp.ge.f32.partialorder %v768_v58, 0.0  ;;  %v771_v61 = vmul.f32 0.1, %v767_v57  ;;  %v772_v62 = vmul.f32 0.1, %v768_v58 }
 0x38a   :  { %vm781_vm5 = vcmp.ge.f32.partialorder %v779_v59, 0.0  ;;  %vm782_vm6 = vcmp.ge.f32.partialorder %v780_v60, 0.0  ;;  %v783_v63 = vmul.f32 0.1, %v779_v59  ;;  %v784_v0 = vmul.f32 0.1, %v780_v60 }
 0x38b   :  { %v773_v1 = vsel %vm769_vm3, %v767_v57, %v771_v61  ;;  %v774_v2 = vsel %vm770_vm4, %v768_v58, %v772_v62 }
 0x38c   :  { %775 = vst [vmem:[%s1085_s11] sm:$0xff] %v773_v1  ;;  %776 = vst [vmem:[%s1085_s11 + $0x8] sm:$0xff] %v774_v2  ;;  %v785_v4 = vsel %vm781_vm5, %v779_v59, %v783_v63  ;;  %v786_v5 = vsel %vm782_vm6, %v780_v60, %v784_v0 }
 0x38d   :  { %810 = vst [vmem:[%s1085_s11 + $0x10] sm:$0xff] %v785_v4  ;;  %811 = vst [vmem:[%s1085_s11 + $0x18] sm:$0xff] %v786_v5 }

</bundles_post_ra>
